<compile_context>
chip_gen: v5e
topology: v5e:2x2
jax: 0.10.0
libtpu: 0.0.40
codegen_flags: <defaults>
</compile_context>

<pallas_src>
import math

import jax
import jax.numpy as jnp
from jax import lax
from jax.experimental import pallas as pl
from jax.experimental.pallas import tpu as pltpu

_INV_SQRT2 = 0.7071067811865476


def _gelu_exact(x):
    # PyTorch nn.GELU() default is the exact erf formulation.
    return 0.5 * x * (1.0 + lax.erf(x * _INV_SQRT2))


def _round_up(x, n):
    return -(-x // n) * n


def _sublane_pack(dtype):
    # Rows per packed sublane group: 8 for 32-bit, 16 for bf16, 32 for int8/fp8.
    return max(8, 32 // jnp.dtype(dtype).itemsize)


def _vmem_budget():
    # Use ~3/4 of physical VMEM (v7x: 48 MiB of 64; v5e/v6e: 96 MiB of 128),
    # leaving the compiler headroom for internal scratch.
    try:
        cap = pltpu.get_tpu_info().vmem_capacity_bytes
    except Exception:  # conservative fallback (safe on every chip)
        cap = 64 << 20
    return max((cap * 3) // 4, 32 << 20)


def _choose_tile_m(m, d_in, h_pad, o_pad, x_dtype, w_dtype, budget):
    pack = _sublane_pack(x_dtype)
    in_sz = jnp.dtype(x_dtype).itemsize
    w_sz = jnp.dtype(w_dtype).itemsize
    # Single-buffered resident weights + f32 biases.
    fixed = w_sz * (d_in * h_pad + h_pad * o_pad) + 4 * (h_pad + o_pad)
    # Per-row VMEM: double-buffered x / out tiles plus the f32 hidden + f32 output
    # intermediates that live between the two matmuls.
    per_row = 2 * in_sz * d_in + 2 * in_sz * o_pad + 4 * h_pad + 4 * o_pad
    avail = max(budget - fixed, per_row * pack)
    vmem_rows = max(pack, (avail // per_row) // pack * pack)

    m_rounded = _round_up(m, pack)
    tile = min(512, vmem_rows, m_rounded)  # big tiles amortize ~0.35us per grid step
    if m_rounded >= 2 * pack:
        # Keep at least two grid steps so the "parallel" M axis covers both v7x TCs.
        tile = min(tile, _round_up(m_rounded // 2, pack))
    return max(tile, pack), fixed, per_row


def _make_mlp_kernel(precision):
    def kernel(x_ref, w1_ref, b1_ref, w2_ref, b2_ref, o_ref):
        # x_ref: (tile_m, d_in); w1_ref: (d_in, h_pad); b1_ref: (1, h_pad)
        # w2_ref: (h_pad, o_pad); b2_ref: (1, o_pad);   o_ref: (tile_m, o_pad)
        x = x_ref[...]
        h = jnp.dot(x, w1_ref[...], preferred_element_type=jnp.float32,
                    precision=precision) + b1_ref[...]
        h = _gelu_exact(h)
        out = jnp.dot(h.astype(w2_ref.dtype), w2_ref[...],
                      preferred_element_type=jnp.float32,
                      precision=precision) + b2_ref[...]
        o_ref[...] = out.astype(o_ref.dtype)
    return kernel


def prepare_mlp_params(w1, b1, w2, b2, *, param_dtype=None):
    """One-time prep (hoisted out of the per-call path): transpose the PyTorch-layout
    weights to lane-dense (K, N) form, optionally cast, and pad hidden / out dims to
    multiples of 128 so stores are unmasked. Zero padding keeps the math exact."""
    hidden, d_in = w1.shape
    d_out, hidden_w = w2.shape
    assert hidden_w == hidden and b1.shape == (hidden,) and b2.shape == (d_out,)

    wdtype = param_dtype if param_dtype is not None else w1.dtype
    h_pad = _round_up(hidden, 128)
    o_pad = _round_up(d_out, 128)

    w1t = jnp.asarray(w1, wdtype).T                      # (d_in, hidden)
    w2t = jnp.asarray(w2, wdtype).T                      # (hidden, d_out)
    if h_pad != hidden:
        w1t = jnp.pad(w1t, ((0, 0), (0, h_pad - hidden)))
        w2t = jnp.pad(w2t, ((0, h_pad - hidden), (0, 0)))
    if o_pad != d_out:
        w2t = jnp.pad(w2t, ((0, 0), (0, o_pad - d_out)))
    b1r = jnp.pad(jnp.asarray(b1, jnp.float32), (0, h_pad - hidden)).reshape(1, h_pad)
    b2r = jnp.pad(jnp.asarray(b2, jnp.float32), (0, o_pad - d_out)).reshape(1, o_pad)

    return {"w1t": w1t, "b1": b1r, "w2t": w2t, "b2": b2r,
            "d_in": d_in, "hidden": hidden, "d_out": d_out}


def mlp_apply(x, params, *, tile_m=None):
    """Fused Mlp forward on pre-prepared params. x: (..., in_features)."""
    w1t, b1r, w2t, b2r = params["w1t"], params["b1"], params["w2t"], params["b2"]
    d_out = params["d_out"]
    d_in, h_pad = w1t.shape
    _, o_pad = w2t.shape

    lead = x.shape[:-1]
    assert x.shape[-1] == d_in
    x2 = x.reshape(-1, d_in)
    m = x2.shape[0]

    budget = _vmem_budget()
    auto_tile, fixed_bytes, per_row = _choose_tile_m(
        m, d_in, h_pad, o_pad, x2.dtype, w1t.dtype, budget)
    pack = _sublane_pack(x2.dtype)
    tile_m = auto_tile if tile_m is None else _round_up(tile_m, pack)

    m_pad = _round_up(m, tile_m)
    if m_pad != m:
        x2 = jnp.pad(x2, ((0, m_pad - m), (0, 0)))
    grid = (m_pad // tile_m,)

    required = fixed_bytes + tile_m * per_row
    vmem_limit = int(max(min(budget, required + (4 << 20)), 16 << 20))

    # Exact-f32 path uses HIGHEST precision so results match the f32 reference even
    # at large reduction sizes; bf16 keeps the fast default MXU path.
    precision = (lax.Precision.HIGHEST
                 if (x2.dtype == jnp.float32 and w1t.dtype == jnp.float32) else None)

    in_sz = jnp.dtype(x2.dtype).itemsize
    w_sz = jnp.dtype(w1t.dtype).itemsize
    flops = 2 * m_pad * d_in * h_pad + 2 * m_pad * h_pad * o_pad
    bytes_accessed = (in_sz * (m_pad * d_in + m_pad * o_pad)
                      + w_sz * (d_in * h_pad + h_pad * o_pad)
                      + 4 * (h_pad + o_pad))

    out = pl.pallas_call(
        _make_mlp_kernel(precision),
        out_shape=jax.ShapeDtypeStruct((m_pad, o_pad), x.dtype),
        grid_spec=pltpu.PrefetchScalarGridSpec(
            num_scalar_prefetch=0,
            grid=grid,
            in_specs=[
                pl.BlockSpec((tile_m, d_in), lambda i: (i, 0)),         # x tile
                pl.BlockSpec((d_in, h_pad), lambda i: (0, 0),           # W1^T resident
                             pipeline_mode=pl.Buffered(1)),
                pl.BlockSpec((1, h_pad), lambda i: (0, 0),              # b1 resident
                             pipeline_mode=pl.Buffered(1)),
                pl.BlockSpec((h_pad, o_pad), lambda i: (0, 0),          # W2^T resident
                             pipeline_mode=pl.Buffered(1)),
                pl.BlockSpec((1, o_pad), lambda i: (0, 0),              # b2 resident
                             pipeline_mode=pl.Buffered(1)),
            ],
            out_specs=pl.BlockSpec((tile_m, o_pad), lambda i: (i, 0)),
        ),
        compiler_params=pltpu.CompilerParams(
            dimension_semantics=("parallel",),
            vmem_limit_bytes=vmem_limit,
        ),
        cost_estimate=pl.CostEstimate(
            flops=flops,
            transcendentals=m_pad * h_pad,
            bytes_accessed=bytes_accessed,
        ),
    )(x2, w1t, b1r, w2t, b2r)

    if m_pad != m or o_pad != d_out:
        out = out[:m, :d_out]
    return out.reshape(*lead, d_out)


def mlp(x, w1, b1, w2, b2, *, tile_m=None, param_dtype=None):
    """Convenience wrapper. For repeated calls, do prepare_mlp_params() once and
    reuse it with mlp_apply() to avoid re-transposing the weights every forward."""
    return mlp_apply(x, prepare_mlp_params(w1, b1, w2, b2, param_dtype=param_dtype),
                     tile_m=tile_m)


def mlp_ref(x, w1, b1, w2, b2):
    """Pure-JAX reference of the same math (exact GELU, f32)."""
    h = x @ w1.T + b1
    h = 0.5 * h * (1.0 + lax.erf(h * _INV_SQRT2))
    return h @ w2.T + b2


if __name__ == "__main__":
    B, N, D_in, D_hidden, D_out = 2, 16, 32, 64, 32
    key = jax.random.PRNGKey(0)
    kx, kw1, kb1, kw2, kb2 = jax.random.split(key, 5)

    x = jax.random.normal(kx, (B, N, D_in), dtype=jnp.float32)

    # Deterministic init mirroring nn.Linear.reset_parameters():
    # kaiming_uniform_(a=sqrt(5)) -> U(-1/sqrt(fan_in), 1/sqrt(fan_in)) for weight,
    # bias -> U(-1/sqrt(fan_in), 1/sqrt(fan_in)).
    bound1 = 1.0 / math.sqrt(D_in)
    w1 = jax.random.uniform(kw1, (D_hidden, D_in), jnp.float32, -bound1, bound1)
    b1 = jax.random.uniform(kb1, (D_hidden,), jnp.float32, -bound1, bound1)
    bound2 = 1.0 / math.sqrt(D_hidden)
    w2 = jax.random.uniform(kw2, (D_out, D_hidden), jnp.float32, -bound2, bound2)
    b2 = jax.random.uniform(kb2, (D_out,), jnp.float32, -bound2, bound2)

    # One-time param prep (transpose / pad) hoisted out of the per-call path.
    params = prepare_mlp_params(w1, b1, w2, b2)
    out = jax.block_until_ready(mlp_apply(x, params))
    ref = mlp_ref(x, w1, b1, w2, b2)

    assert out.shape == (B, N, D_out)
    assert jnp.allclose(out, ref, atol=1e-5, rtol=1e-5), float(jnp.max(jnp.abs(out - ref)))

    print("KERNEL_OK")
</pallas_src>

<mosaic_0001>
module attributes {stable_mosaic.version = 11 : i64} {
  func.func @kernel(%arg0: i32, %arg1: memref<16x32xf32, #tpu.memory_space<vmem>>, %arg2: memref<32x128xf32, #tpu.memory_space<vmem>>, %arg3: memref<1x128xf32, #tpu.memory_space<vmem>>, %arg4: memref<128x128xf32, #tpu.memory_space<vmem>>, %arg5: memref<1x128xf32, #tpu.memory_space<vmem>>, %arg6: memref<16x128xf32, #tpu.memory_space<vmem>>) attributes {dimension_semantics = [#tpu.dimension_semantics<parallel>], iteration_bounds = array<i64: 2>, scalar_prefetch = 0 : i64, scratch_operands = 0 : i64, tpu.core_type = #tpu.core_type<tc>, window_params = [{transform_indices = @transform_0, window_bounds = array<i64: 16, 32>}, {pipeline_mode = #tpu.pipeline_mode<synchronous>, transform_indices = @transform_1, window_bounds = array<i64: 32, 128>}, {pipeline_mode = #tpu.pipeline_mode<synchronous>, transform_indices = @transform_2, window_bounds = array<i64: 1, 128>}, {pipeline_mode = #tpu.pipeline_mode<synchronous>, transform_indices = @transform_3, window_bounds = array<i64: 128, 128>}, {pipeline_mode = #tpu.pipeline_mode<synchronous>, transform_indices = @transform_4, window_bounds = array<i64: 1, 128>}, {transform_indices = @transform_5, window_bounds = array<i64: 16, 128>}]} {
    %c0 = arith.constant 0 : index
    %c0_0 = arith.constant 0 : index
    %0 = vector.load %arg1[%c0, %c0_0] : memref<16x32xf32, #tpu.memory_space<vmem>>, vector<16x32xf32>
    %c0_1 = arith.constant 0 : index
    %c0_2 = arith.constant 0 : index
    %1 = vector.load %arg2[%c0_1, %c0_2] : memref<32x128xf32, #tpu.memory_space<vmem>>, vector<32x128xf32>
    %cst = arith.constant dense<0.000000e+00> : vector<16x128xf32>
    %2 = tpu.matmul %0, %1, %cst {dimension_numbers = #tpu.dot_dimension_numbers<[1], [0], [0], [1], [0, 0, 1, 1], [], []>, precision = #tpu.contract_precision<fp32>} : vector<16x32xf32>, vector<32x128xf32>, vector<16x128xf32> -> vector<16x128xf32>
    %c0_3 = arith.constant 0 : index
    %c0_4 = arith.constant 0 : index
    %3 = vector.load %arg3[%c0_3, %c0_4] : memref<1x128xf32, #tpu.memory_space<vmem>>, vector<1x128xf32>
    %4 = vector.broadcast %3 : vector<1x128xf32> to vector<16x128xf32>
    %5 = arith.addf %2, %4 : vector<16x128xf32>
    %cst_5 = arith.constant 5.000000e-01 : f32
    %6 = vector.broadcast %cst_5 : f32 to vector<16x128xf32>
    %7 = arith.mulf %6, %5 : vector<16x128xf32>
    %cst_6 = arith.constant 0.707106769 : f32
    %8 = vector.broadcast %cst_6 : f32 to vector<16x128xf32>
    %9 = arith.mulf %5, %8 : vector<16x128xf32>
    %10 = math.erf %9 : vector<16x128xf32>
    %cst_7 = arith.constant 1.000000e+00 : f32
    %11 = vector.broadcast %cst_7 : f32 to vector<16x128xf32>
    %12 = arith.addf %11, %10 : vector<16x128xf32>
    %13 = arith.mulf %7, %12 : vector<16x128xf32>
    %c0_8 = arith.constant 0 : index
    %c0_9 = arith.constant 0 : index
    %14 = vector.load %arg4[%c0_8, %c0_9] : memref<128x128xf32, #tpu.memory_space<vmem>>, vector<128x128xf32>
    %cst_10 = arith.constant dense<0.000000e+00> : vector<16x128xf32>
    %15 = tpu.matmul %13, %14, %cst_10 {dimension_numbers = #tpu.dot_dimension_numbers<[1], [0], [0], [1], [0, 0, 1, 1], [], []>, precision = #tpu.contract_precision<fp32>} : vector<16x128xf32>, vector<128x128xf32>, vector<16x128xf32> -> vector<16x128xf32>
    %c0_11 = arith.constant 0 : index
    %c0_12 = arith.constant 0 : index
    %16 = vector.load %arg5[%c0_11, %c0_12] : memref<1x128xf32, #tpu.memory_space<vmem>>, vector<1x128xf32>
    %17 = vector.broadcast %16 : vector<1x128xf32> to vector<16x128xf32>
    %18 = arith.addf %15, %17 : vector<16x128xf32>
    %c0_13 = arith.constant 0 : index
    %c0_14 = arith.constant 0 : index
    %19 = vector.load %arg6[%c0_13, %c0_14] : memref<16x128xf32, #tpu.memory_space<vmem>>, vector<16x128xf32>
    tpu.vector_store %arg6[%c0_13, %c0_14], %18 {strides = array<i32>} : memref<16x128xf32, #tpu.memory_space<vmem>>, vector<16x128xf32>,
    return
  }
  func.func @transform_0(%arg0: i32) -> (i32, i32) {
    %c0_i32 = arith.constant 0 : i32
    %c0_i32_0 = arith.constant 0 : i32
    return %arg0, %c0_i32 : i32, i32
  }
  func.func @transform_1(%arg0: i32) -> (i32, i32) {
    %c0_i32 = arith.constant 0 : i32
    %c0_i32_0 = arith.constant 0 : i32
    %c0_i32_1 = arith.constant 0 : i32
    return %c0_i32, %c0_i32_0 : i32, i32
  }
  func.func @transform_2(%arg0: i32) -> (i32, i32) {
    %c0_i32 = arith.constant 0 : i32
    %c0_i32_0 = arith.constant 0 : i32
    %c0_i32_1 = arith.constant 0 : i32
    return %c0_i32, %c0_i32_0 : i32, i32
  }
  func.func @transform_3(%arg0: i32) -> (i32, i32) {
    %c0_i32 = arith.constant 0 : i32
    %c0_i32_0 = arith.constant 0 : i32
    %c0_i32_1 = arith.constant 0 : i32
    return %c0_i32, %c0_i32_0 : i32, i32
  }
  func.func @transform_4(%arg0: i32) -> (i32, i32) {
    %c0_i32 = arith.constant 0 : i32
    %c0_i32_0 = arith.constant 0 : i32
    %c0_i32_1 = arith.constant 0 : i32
    return %c0_i32, %c0_i32_0 : i32, i32
  }
  func.func @transform_5(%arg0: i32) -> (i32, i32) {
    %c0_i32 = arith.constant 0 : i32
    %c0_i32_0 = arith.constant 0 : i32
    return %arg0, %c0_i32 : i32, i32
  }
}

</mosaic_0001>

<bundles_post_ra>
// kernel: tpu_custom_call.1
= control target key start
LH: loop header
LB: loop body
LE: loop exit
PB: predicated region body
PF: predicated region fallthrough
CT: control target
= control target key end

     0   :  { %10 = vsyncpa [#allocation3], 0  ;;  %s1846_s0 = inlined_call_operand.hbm [shape: f32[32,32], index: 0, kind: input, shape index: {}]   ;;  %s1847_s1 = inlined_call_operand.hbm [shape: f32[32,128], index: 1, kind: input, shape index: {}]   ;;  %s1848_s2 = inlined_call_operand.vmem [shape: f32[1,128], index: 2, kind: input, shape index: {}]   ;;  %s1849_s3 = inlined_call_operand.hbm [shape: f32[128,128], index: 3, kind: input, shape index: {}]   ;;  %s1850_s4 = inlined_call_operand.vmem [shape: f32[1,128], index: 4, kind: input, shape index: {}]   ;;  %s1851_s5 = inlined_call_operand.hbm [shape: f32[32,128], index: 5, kind: output, shape index: {}]  }
   0x1   :  { %12 = vsyncpa [#allocation3 + $0x1], 0 }
   0x2   :  { %13 = vsyncpa [#allocation6], 0 }
   0x3   :  { %14 = vsyncpa [#allocation4], 0 }
   0x4   :  { %16 = vsyncpa [#allocation4 + $0x1], 0  ;;  %s1400_s18 = smov 0   ;;  %s1402_s19 = smov 0  }
   0x5   :  { %s1404_s20 = smov 0   ;;  %s1406_s21 = smov 0  }
   0x6 LB: > { %s1421_s22 = sadd.s32 4294967295, %s1362_s21   ;;  %s1103_s23 = sadd.s32 4294967294, %s1362_s21   ;;  %s1362_s21 = sphi %s1406_s21, %s1863_s21   ;;  %s1358_s20 = sphi %s1404_s20, %s1862_s20   ;;  %s1354_s19 = sphi %s1402_s19, %s1861_s19   ;;  %s1350_s18 = sphi %s1400_s18, %s1860_s18  }
   0x7   : > { %p42_p0 = scmp.ne.s32.totalorder %s1354_s19, %s1350_s18  ;;  %p43_p1 = scmp.eq.s32.totalorder %s1421_s22, 0 }
   0x8   : > { %p150_p2 = scmp.eq.s32.totalorder %s1421_s22, 1  ;;  %p156_p3 = scmp.eq.s32.totalorder %s1103_s23, 1 }
   0x9   : > { %p1430_p4 = por %p43_p1, %p42_p0  ;;  %p1104_p5 = scmp.ge.s32.totalorder %s1362_s21, 1 }
   0xa   : > { %p1435_p6 = por %p156_p3, %p42_p0  ;;  %p163_p7 = scmp.lt.s32.totalorder %s1362_s21, 3 }
   0xb   : > { %s174_s28 = sshll.u32 %s1847_s1, 4  ;;  %s1364_s30 = smov [#allocation5]   ;;  %s175_s28 = int_to_ptr.hbm [resolvable:$true] %s174_s28 }
   0xc   : > { %p1443_p8 = pnand %p1104_p5, %p163_p7  ;;  %s176_s6 = sshll.u32 %s1364_s30, 4  ;;  %s177_s6 = int_to_ptr.vmem [resolvable:$true] %s176_s6 }
   0xd   : > { %s191_s9 = sshll.u32 %s1849_s3, 4  ;;  %s1852_s10 = smov 128   ;;  %s192_s9 = int_to_ptr.hbm [resolvable:$true] %s191_s9 }
   0xe   : > { %p1137_p9 = pneg %p1443_p8  ;;  %s1366_s11 = smov 8  }
   0xf   : > { %s1367_s12 = smov [#allocation7]   ;;  %s1462_s14 = sadd.s32 1, %s1362_s21  }
  0x10   : > { %p1138_p10 = pnand %p1137_p9, %p43_p1  ;;  %s193_s13 = sshll.u32 %s1367_s12, 4  ;;  %s194_s13 = int_to_ptr.vmem [resolvable:$true] %s193_s13 }
  0x11   : > { %s29_s15 = sadd.s32 1, %s1358_s20  ;;  %s26_s16 = ssub.s32 %s1362_s21, %s1462_s14 }
  0x12   : > { %1140 = dma.hbm_to_vmem [thread:$0]  (!%p1138_p10), %s175_s28, 512, %s177_s6, [#allocation6], %s1852_s10, %s1852_s10, %s1366_s11  }
  0x13   : > { %1143 = dma.hbm_to_vmem [thread:$0]  (!%p1138_p10), %s192_s9, 2048, %s194_s13, [#allocation6], %s1852_s10, %s1852_s10, %s1366_s11  }
  0x14   : > { %p36_p12 = scmp.ne.s32.totalorder %s1358_s20, %s1354_s19  ;;  %p27_p13 = scmp.eq.s32.totalorder %s26_s16, 0 }
  0x15   : > { %p37_p0 = scmp.eq.s32.totalorder %s1362_s21, 0  ;;  %p1154_p5 = scmp.lt.s32.totalorder %s1362_s21, 2 }
  0x16   : > { %p1472_p3 = por %p150_p2, %p36_p12  ;;  %s210_s26 = sand.u32 1, %s1358_s20  }
  0x17   : > { %s1478_s23 = scalar_select %p27_p13, %s1358_s20, %s29_s15  }
  0x18   : > { %p38_p7 = por %p37_p0, %p36_p12  ;;  %s1108_s27 = sshll.u32 %s210_s26, 4 }
  0x19   : > { %s1123_s28 = sshll.u32 %s1362_s21, 4  ;;  %s214_s8 = scalar_lea.vmem [#allocation2], %s1108_s27 }
  0x1a   : > { %s219_s7 = scalar_lea.hbm %s1846_s0, %s1123_s28  ;;  %s222_s9 = sshll.u32 %s214_s8, 4  ;;  %s223_s9 = int_to_ptr.vmem [resolvable:$true] %s222_s9 }
  0x1b   : > { %s220_s12 = sshll.u32 %s219_s7, 4  ;;  %p1485_p2 = pnand %p1154_p5, %p38_p7  ;;  %s221_s12 = int_to_ptr.hbm [resolvable:$true] %s220_s12 }
  0x1c   : > { %s211_s15 = scalar_lea.sflag [#allocation3], %s210_s26  ;;  %s1262_s16 = sshra.s32 %s221_s12, 4  ;;  %s1263_s16 = int_to_ptr.hbm [resolvable:$true] %s1262_s16 }
  0x1d   : > { %s1264_s10 = scalar_lea.hbm %s1263_s16, 16  ;;  %p1266_p10 = pneg %p1485_p2 }
  0x1e   : > { %p1265_p9 = scmp.ne.s32.totalorder %s1263_s16, %s1264_s10  ;;  %s1269_s30 = scalar_lea.hbm %s1846_s0, 32 }
  0x1f   : > { %p1270_p0 = scmp.lt.s32.totalorder %s1263_s16, %s1846_s0  ;;  %p1271_p5 = scmp.lt.s32.totalorder %s1269_s30, %s1264_s10 }
  0x20   : > { %p1267_p12 = pnand %p1266_p10, %p1265_p9 }
  0x21   : > { %p1272_p7 = por %p1271_p5, %p1270_p0 }
  0x22   : > { %p1268_p13 = pneg %p1267_p12 }
  0x24   : > { %p1273_p11 = pnand %p1272_p7, %p1268_p13 }
  0x26   : > { %1276 = shalt.err (!%p1273_p11)
}
  0x27   : > { %s1858_s26 = smov 128   ;;  %234 = sbr.rel (%p1443_p8) target bundleno = 434 (0x1b2), region = 40 }
  0x28   : > { %1147 = dma.hbm_to_vmem [thread:$0]  (!%p1485_p2), %s221_s12, 256, %s223_s9, %s211_s15, %s1858_s26, %s1858_s26, %s1366_s11  }
  0x29   : > { %s1505_s8 = sand.u32 (!%p1443_p8), 1, %s1354_s19  }
  0x2a   : > { %s1112_s10 = sshll.u32 (!%p1443_p8), %s1505_s8, 4  ;;  %s237_s16 = scalar_lea.sflag (!%p1443_p8), [#allocation3], %s1505_s8 }
  0x2b   : > { %s240_s28 = scalar_lea.vmem (!%p1443_p8), [#allocation2], %s1112_s10 }
  0x2c   : > { %1337 = dma.done.wait (%p1430_p4), %s237_s16, 256  }
  0x2d   : > { %1339 = vsyncadd (%p1430_p4), %s237_s16, 4294967040 }
  0x2e   : > { %1341 = dma.done.wait (%p43_p1), [#allocation6], 2560  }
  0x2f   : > { %1343 = vsyncadd (%p43_p1), [#allocation6], 4294964736  ;;  %vm290_vm0 = vcmask 261120   ;;  %v285_v0 = vld [vmem:[#allocation5 + $0x18] sm:$0xff]  ;;  %v284_v1 = vld [vmem:[#allocation5 + $0x10] sm:$0xff]  ;;  %s1124_s12 = sshll.u32 %s1421_s22, 4 }
  0x30   : > { %v283_v2 = vld [vmem:[#allocation5 + $0x8] sm:$0xff]  ;;  %v309_v3 = vand.u32 4294901760, %v285_v0  ;;  %v311_v4 = vand.u32 4294901760, %v284_v1  ;;  %v282_v6 = vld [vmem:[#allocation5] sm:$0xff]  ;;  %v616_v38 = vld [vmem:[#allocation7 + $0x78] sm:$0xff]  ;;  %s1007_s27 = scalar_lea.hbm %s1851_s5, %s1124_s12  ;;  %s277_s30 = scalar_lea.vmem [#allocation8], %s1112_s10 }
  0x31   : > { %v313_v5 = vand.u32 4294901760, %v283_v2  ;;  %v280_v7 = vld [vmem:[%s240_s28] sm:$0xff]  ;;  %v281_v8 = vld [vmem:[%s240_s28 + $0x8] sm:$0xff]  ;;  %v315_v9 = vand.u32 4294901760, %v282_v6  ;;  %v1519_v39 = vand.u32 4294901760, %v616_v38  ;;  %s1008_s6 = sshll.u32 %s277_s30, 4  ;;  %s1009_s6 = int_to_ptr.vmem [resolvable:$true] %s1008_s6 }
  0x32   : > { %v292_v10 = vsel %vm290_vm0, %v280_v7, 0  ;;  %v295_v11 = vsel %vm290_vm0, %v281_v8, 0  ;;  %310 = vmatpush.msra.mxu0 %v309_v3  ;;  %v347_v12 = vsub.f32 %v285_v0, %v309_v3  ;;  %v353_v13 = vsub.f32 %v284_v1, %v311_v4  ;;  %427 = vmatpush.msra.mxu3 %v309_v3  ;;  %v615_v40 = vld [vmem:[#allocation7 + $0x70] sm:$0xff]  ;;  %v614_v43 = vld [vmem:[#allocation7 + $0x68] sm:$0xff]  ;;  %v613_v47 = vld [vmem:[#allocation7 + $0x60] sm:$0xff]  ;;  %s1010_s7 = sshll.u32 %s1007_s27, 4  ;;  %s1011_s7 = int_to_ptr.hbm [resolvable:$true] %s1010_s7 }
  0x33   : > { %v359_v14 = vsub.f32 %v283_v2, %v313_v5  ;;  %v317_v15 = vand.u32 4294901760, %v292_v10  ;;  %v365_v16 = vsub.f32 %v282_v6, %v315_v9  ;;  %v325_v17 = vand.u32 4294901760, %v295_v11  ;;  %v612_v52 = vld [vmem:[#allocation7 + $0x58] sm:$0xff]  ;;  %v611_v59 = vld [vmem:[#allocation7 + $0x50] sm:$0xff]  ;;  %v1569_v63 = vld [vmem:[%s1848_s2] ss:$0 sm:$0xff] }
  0x34   : > { %312 = vmatpush.msra.mxu0 %v311_v4  ;;  %393 = vmatpush.msra.mxu2 %v347_v12  ;;  %v348_v18 = vand.u32 4294901760, %v347_v12  ;;  %v354_v20 = vand.u32 4294901760, %v353_v13  ;;  %v1522_v41 = vsub.f32 %v616_v38, %v1519_v39  ;;  %v1524_v42 = vand.u32 4294901760, %v615_v40  ;;  %v610_v2 = vld [vmem:[#allocation7 + $0x48] sm:$0xff]  ;;  %v609_v8 = vld [vmem:[#allocation7 + $0x40] sm:$0xff]  ;;  %s996_s22 = scalar_lea.sflag [#allocation4], %s1505_s8 }
  0x35   : > { %v318_v19 = vsub.f32 %v292_v10, %v317_v15  ;;  %v360_v21 = vand.u32 4294901760, %v359_v14  ;;  %429 = vmatpush.msra.mxu3 %v311_v4  ;;  %v366_v22 = vand.u32 4294901760, %v365_v16  ;;  %v326_v23 = vsub.f32 %v295_v11, %v325_v17  ;;  %s1306_s26 = sshra.s32 %s1011_s7, 4  ;;  %s1312_s24 = scalar_lea.hbm %s1851_s5, 32  ;;  %s1307_s26 = int_to_ptr.hbm [resolvable:$true] %s1306_s26 }
  0x36   : > { %314 = vmatpush.msra.mxu0 %v313_v5  ;;  %396 = vmatpush.msra.mxu2 %v353_v13  ;;  %v349_v24 = vsub.f32 %v347_v12, %v348_v18  ;;  %v355_v26 = vsub.f32 %v353_v13, %v354_v20  ;;  %v672_v44 = vand.u32 4294901760, %v1522_v41  ;;  %v1530_v45 = vsub.f32 %v615_v40, %v1524_v42  ;;  %s1308_s16 = scalar_lea.hbm %s1307_s26, 16  ;;  %p1313_p11 = scmp.lt.s32.totalorder %s1307_s26, %s1851_s5 }
  0x37   : > { %v319_v25 = vand.u32 4294901760, %v318_v19  ;;  %v361_v27 = vsub.f32 %v359_v14, %v360_v21  ;;  %431 = vmatpush.msra.mxu3 %v313_v5  ;;  %v367_v28 = vsub.f32 %v365_v16, %v366_v22  ;;  %v327_v32 = vand.u32 4294901760, %v326_v23  ;;  %p1309_p1 = scmp.ne.s32.totalorder %s1307_s26, %s1308_s16  ;;  %p1314_p2 = scmp.lt.s32.totalorder %s1312_s24, %s1308_s16 }
  0x38   : > { %316 = vmatpush.msra.mxu0 %v315_v9  ;;  %v350_v29 = vand.u32 4294901760, %v349_v24  ;;  %399 = vmatpush.msra.mxu2 %v359_v14  ;;  %v356_v31 = vand.u32 4294901760, %v355_v26  ;;  %v1532_v46 = vand.u32 4294901760, %v614_v43  ;;  %v673_v48 = vsub.f32 %v1522_v41, %v672_v44 }
  0x39   : > { %v320_v30 = vsub.f32 %v318_v19, %v319_v25  ;;  %433 = vmatpush.msra.mxu3 %v315_v9  ;;  %v362_v34 = vand.u32 4294901760, %v361_v27  ;;  %v368_v35 = vand.u32 4294901760, %v367_v28  ;;  %v328_v36 = vsub.f32 %v326_v23, %v327_v32  ;;  %p1310_p4 = pnand %p1309_p1, %p1472_p3  ;;  %p1315_p9 = por %p1314_p2, %p1313_p11 }
  0x3a   : > { %462 = vmatpush.msrb.mxu0 %v348_v18  ;;  %351 = vmatpush.msra.mxu1 %v350_v29  ;;  %v678_v49 = vand.u32 4294901760, %v1530_v45  ;;  %v1542_v50 = vsub.f32 %v614_v43, %v1532_v46  ;;  %v1544_v51 = vand.u32 4294901760, %v613_v47  ;;  %v674_v53 = vand.u32 4294901760, %v673_v48 }
  0x3b   : > { %v321_v33 = vand.u32 4294901760, %v320_v30  ;;  %402 = vmatpush.msra.mxu2 %v365_v16  ;;  %437 = vmatmul.f32.vlgmr.msra.gmra.mxu3 %v319_v25  ;;  %v329_v37 = vand.u32 4294901760, %v328_v36  ;;  %v1558_v58 = vand.u32 4294901760, %v612_v52  ;;  %v1574_v1 = vand.u32 4294901760, %v611_v59  ;;  %v608_v16 = vld [vmem:[#allocation7 + $0x38] sm:$0xff]  ;;  %p1311_p8 = pneg %p1310_p4 }
  0x3c   : > { %405 = vmatmul.f32.vlgmr.msra.gmra.mxu2 %v318_v19  ;;  %357 = vmatpush.msra.mxu1 %v356_v31  ;;  %v679_v54 = vsub.f32 %v1530_v45, %v678_v49  ;;  %v684_v55 = vand.u32 4294901760, %v1542_v50  ;;  %v1554_v56 = vsub.f32 %v613_v47, %v1544_v51  ;;  %v1592_v12 = vand.u32 4294901760, %v609_v8  ;;  %v606_v31 = vld [vmem:[#allocation7 + $0x28] sm:$0xff] }
  0x3d   : > { %322 = vmatmul.f32.vlgmr.msra.gmra.mxu0 %v321_v33  ;;  %622 = vmatpush.msrb.mxu2 %v1519_v39  ;;  %v1572_v0 = vsub.f32 %v612_v52, %v1558_v58  ;;  %v1585_v7 = vsub.f32 %v611_v59, %v1574_v1  ;;  %v1606_v19 = vand.u32 4294901760, %v608_v16  ;;  %v604_v59 = vld [vmem:[#allocation7 + $0x18] sm:$0xff]  ;;  %p1316_p10 = pnand %p1315_p9, %p1311_p8 }
  0x3e   : > { %466 = vmatpush.msrb.mxu0 %v354_v20  ;;  %363 = vmatpush.msra.mxu1 %v362_v34  ;;  %v680_v60 = vand.u32 4294901760, %v679_v54  ;;  %v685_v61 = vsub.f32 %v1542_v50, %v684_v55  ;;  %v690_v62 = vand.u32 4294901760, %v1554_v56  ;;  %v1604_v18 = vsub.f32 %v609_v8, %v1592_v12  ;;  %v603_v8 = vld [vmem:[#allocation7 + $0x10] sm:$0xff] }
  0x3f   : > { %624 = vmatpush.msrb.mxu2 %v1524_v42  ;;  %675 = vmatpush.msrb.mxu3 %v674_v53  ;;  %v696_v6 = vand.u32 4294901760, %v1572_v0  ;;  %v1619_v27 = vsub.f32 %v608_v16, %v1606_v19 }
  0x40   : > { %470 = vmatpush.msrb.mxu0 %v360_v21  ;;  %369 = vmatpush.msra.mxu1 %v368_v35  ;;  %v714_v26 = vand.u32 4294901760, %v1604_v18  ;;  %v1629_v35 = vand.u32 4294901760, %v606_v31 }
  0x41   : > { %371 = vmatmul.f32.vlgmr.msra.gmra.mxu1 %v317_v15  ;;  %626 = vmatpush.msrb.mxu2 %v1532_v46  ;;  %v697_v14 = vsub.f32 %v1572_v0, %v696_v6  ;;  %v720_v34 = vand.u32 4294901760, %v1619_v27 }
  0x42   : > { %474 = vmatpush.msrb.mxu0 %v366_v22  ;;  %497 = vmatpush.msrb.mxu1 %v309_v3  ;;  %v686_v3 = vand.u32 4294901760, %v685_v61  ;;  %v715_v33 = vsub.f32 %v1604_v18, %v714_v26  ;;  %v1641_v48 = vsub.f32 %v606_v31, %v1629_v35 }
  0x43   : > { %443 = vmatmul.f32.gmra.mxu3 %v327_v32  ;;  %628 = vmatpush.msrb.mxu2 %v1544_v51  ;;  %v698_v21 = vand.u32 4294901760, %v697_v14  ;;  %v721_v47 = vsub.f32 %v1619_v27, %v720_v34 }
  0x44   : > { %410 = vmatmul.f32.gmra.mxu2 %v326_v23  ;;  %499 = vmatpush.msrb.mxu1 %v311_v4  ;;  %v691_v4 = vsub.f32 %v1554_v56, %v690_v62  ;;  %v607_v23 = vld [vmem:[#allocation7 + $0x30] sm:$0xff]  ;;  %v716_v43 = vand.u32 4294901760, %v715_v33  ;;  %v732_v61 = vand.u32 4294901760, %v1641_v48  ;;  %v601_v33 = vld [vmem:[#allocation7] sm:$0xff] }
  0x45   : > { %330 = vmatmul.f32.gmra.mxu0 %v329_v37  ;;  %630 = vmatpush.msrb.mxu2 %v1558_v58  ;;  %v1622_v30 = vand.u32 4294901760, %v607_v23  ;;  %v605_v37 = vld [vmem:[#allocation7 + $0x20] sm:$0xff] }
  0x46   : > { %501 = vmatpush.msrb.mxu1 %v313_v5  ;;  %777 = vmatpush.msra.mxu0 %v1522_v41  ;;  %v1581_v5 = vand.u32 4294901760, %v610_v2  ;;  %v692_v10 = vand.u32 4294901760, %v691_v4  ;;  %v1643_v52 = vand.u32 4294901760, %v605_v37 }
  0x47   : > { %681 = vmatpush.msrb.mxu3 %v680_v60  ;;  %632 = vmatpush.msrb.mxu2 %v1574_v1  ;;  %v1634_v36 = vsub.f32 %v607_v23, %v1622_v30  ;;  %v722_v60 = vand.u32 4294901760, %v721_v47  ;;  %v1692_v47 = vand.u32 4294901760, %v601_v33 }
  0x48   : > { %503 = vmatpush.msrb.mxu1 %v315_v9  ;;  %780 = vmatpush.msra.mxu0 %v1530_v45  ;;  %v1590_v11 = vsub.f32 %v610_v2, %v1581_v5  ;;  %v1652_v2 = vsub.f32 %v605_v37, %v1643_v52 }
  0x49   : > { %375 = vmatmul.f32.gmra.mxu1 %v325_v17  ;;  %687 = vmatpush.msrb.mxu3 %v686_v3  ;;  %v1654_v3 = vand.u32 4294901760, %v604_v59 }
  0x4a   : > { %835 = vmatpush.msra.mxu1 %v1519_v39  ;;  %783 = vmatpush.msra.mxu0 %v1542_v50 }
  0x4b   : > { %634 = vmatpush.msrb.mxu2 %v1581_v5  ;;  %693 = vmatpush.msrb.mxu3 %v692_v10  ;;  %v738_v10 = vand.u32 4294901760, %v1652_v2 }
  0x4c   : > { %837 = vmatpush.msra.mxu1 %v1524_v42  ;;  %786 = vmatpush.msra.mxu0 %v1554_v56 }
  0x4d   : > { %476 = vmatmul.f32.vlgmr.msrb.gmra.mxu0 %v317_v15  ;;  %636 = vmatpush.msrb.mxu2 %v1592_v12 }
  0x4e   : > { %839 = vmatpush.msra.mxu1 %v1532_v46  ;;  %789 = vmatpush.msra.mxu0 %v1572_v0 }
  0x4f   : > { %699 = vmatpush.msrb.mxu3 %v698_v21  ;;  %638 = vmatpush.msrb.mxu2 %v1606_v19  ;;  %v1671_v21 = vand.u32 4294901760, %v603_v8 }
  0x50   : > { %841 = vmatpush.msra.mxu1 %v1544_v51  ;;  %792 = vmatpush.msra.mxu0 %v1585_v7 }
  0x51   : > { %505 = vmatmul.f32.vlgmr.msrb.gmra.mxu1 %v317_v15  ;;  %v702_v15 = vand.u32 4294901760, %v1585_v7  ;;  %640 = vmatpush.msrb.mxu2 %v1622_v30 }
  0x52   : > { %843 = vmatpush.msra.mxu1 %v1558_v58  ;;  %795 = vmatpush.msra.mxu0 %v1590_v11 }
  0x53   : > { %v703_v22 = vsub.f32 %v1585_v7, %v702_v15  ;;  %642 = vmatpush.msrb.mxu2 %v1629_v35 }
  0x54   : > { %845 = vmatpush.msra.mxu1 %v1574_v1  ;;  %798 = vmatpush.msra.mxu0 %v1604_v18 }
  0x55   : > { %480 = vmatmul.f32.gmra.mxu0 %v325_v17  ;;  %v704_v29 = vand.u32 4294901760, %v703_v22  ;;  %644 = vmatpush.msrb.mxu2 %v1643_v52  ;;  %v602_v22 = vld [vmem:[#allocation7 + $0x8] sm:$0xff] }
  0x56   : > { %847 = vmatpush.msra.mxu1 %v1581_v5  ;;  %801 = vmatpush.msra.mxu0 %v1619_v27 }
  0x57   : > { %705 = vmatpush.msrb.mxu3 %v704_v29  ;;  %646 = vmatpush.msrb.mxu2 %v1654_v3  ;;  %v1678_v29 = vand.u32 4294901760, %v602_v22 }
  0x58   : > { %849 = vmatpush.msra.mxu1 %v1592_v12  ;;  %804 = vmatpush.msra.mxu0 %v1634_v36 }
  0x59   : > { %509 = vmatmul.f32.gmra.mxu1 %v325_v17  ;;  %v708_v17 = vand.u32 4294901760, %v1590_v11  ;;  %648 = vmatpush.msrb.mxu2 %v1671_v21 }
  0x5a   : > { %851 = vmatpush.msra.mxu1 %v1606_v19  ;;  %807 = vmatpush.msra.mxu0 %v1641_v48 }
  0x5b   : > { %v709_v25 = vsub.f32 %v1590_v11, %v708_v17  ;;  %650 = vmatpush.msrb.mxu2 %v1678_v29 }
  0x5c   : > { %853 = vmatpush.msra.mxu1 %v1622_v30  ;;  %810 = vmatpush.msra.mxu0 %v1652_v2 }
  0x5d   : > { %v710_v32 = vand.u32 4294901760, %v709_v25  ;;  %v739_v25 = vsub.f32 %v1652_v2, %v738_v10  ;;  %652 = vmatpush.msrb.mxu2 %v1692_v47 }
  0x5e   : > { %855 = vmatpush.msra.mxu1 %v1629_v35 }
  0x5f   : > { %711 = vmatpush.msrb.mxu3 %v710_v32  ;;  %v1683_v32 = vsub.f32 %v603_v8, %v1671_v21  ;;  %v1702_v8 = vsub.f32 %v601_v33, %v1692_v47  ;;  %882 = vmatpush.msra.mxu2 %v672_v44 }
  0x60   : > { %857 = vmatpush.msra.mxu1 %v1643_v52 }
  0x61   : > { %717 = vmatpush.msrb.mxu3 %v716_v43  ;;  %v1690_v43 = vsub.f32 %v602_v22, %v1678_v29  ;;  %v762_v22 = vand.u32 4294901760, %v1702_v8  ;;  %886 = vmatpush.msra.mxu2 %v678_v49 }
  0x62   : > { %859 = vmatpush.msra.mxu1 %v1654_v3 }
  0x63   : > { %723 = vmatpush.msrb.mxu3 %v722_v60  ;;  %v763_v33 = vsub.f32 %v1702_v8, %v762_v22  ;;  %890 = vmatpush.msra.mxu2 %v684_v55 }
  0x64   : > { %861 = vmatpush.msra.mxu1 %v1671_v21 }
  0x65   : > { %894 = vmatpush.msra.mxu2 %v690_v62 }
  0x66   : > { %863 = vmatpush.msra.mxu1 %v1678_v29 }
  0x67   : > { %898 = vmatpush.msra.mxu2 %v696_v6 }
  0x68   : > { %865 = vmatpush.msra.mxu1 %v1692_v47 }
  0x69   : > { %902 = vmatpush.msra.mxu2 %v702_v15 }
  0x6b   : > { %906 = vmatpush.msra.mxu2 %v708_v17 }
  0x6d   : > { %910 = vmatpush.msra.mxu2 %v714_v26 }
  0x6f   : > { %914 = vmatpush.msra.mxu2 %v720_v34 }
  0xba   : > { %v323_v57 = vpop.f32.mrf.mxu0 }
  0xbb   : > { %v324_v13 = vadd.f32 %v1569_v63, %v323_v57  ;;  %v726_v57 = vand.u32 4294901760, %v1634_v36 }
  0xbd   : > { %v727_v4 = vsub.f32 %v1634_v36, %v726_v57  ;;  %918 = vmatpush.msra.mxu2 %v726_v57 }
  0xbe   : > { %v372_v9 = vpop.f32.mrf.mxu1  ;;  %v438_v38 = vpop.f32.mrf.mxu3 }
  0xbf   : > { %v406_v24 = vpop.f32.mrf.mxu2  ;;  %v373_v28 = vadd.f32 %v372_v9, %v324_v13  ;;  %v733_v9 = vsub.f32 %v1641_v48, %v732_v61  ;;  %v1667_v13 = vsub.f32 %v604_v59, %v1654_v3  ;;  %v750_v59 = vand.u32 4294901760, %v1683_v32  ;;  %922 = vmatpush.msra.mxu2 %v732_v61 }
  0xc1   : > { %v407_v54 = vadd.f32 %v406_v24, %v373_v28  ;;  %v734_v24 = vand.u32 4294901760, %v733_v9  ;;  %v744_v28 = vand.u32 4294901760, %v1667_v13  ;;  %813 = vmatpush.msra.mxu0 %v1667_v13  ;;  %926 = vmatpush.msra.mxu2 %v738_v10 }
  0xc2   : > { %v331_v20 = vpop.f32.mrf.mxu0 }
  0xc3   : > { %v332_v53 = vadd.f32 %v1569_v63, %v331_v20  ;;  %v439_v14 = vadd.f32 %v438_v38, %v407_v54  ;;  %v728_v20 = vand.u32 4294901760, %v727_v4  ;;  %v740_v38 = vand.u32 4294901760, %v739_v25  ;;  %816 = vmatpush.msra.mxu0 %v1683_v32  ;;  %930 = vmatpush.msra.mxu2 %v744_v28 }
  0xc4   : > { %v756_v4 = vand.u32 4294901760, %v1690_v43 }
  0xc5   : > { %729 = vmatpush.msrb.mxu3 %v728_v20  ;;  %819 = vmatpush.msra.mxu0 %v1690_v43 }
  0xc6   : > { %v376_v40 = vpop.f32.mrf.mxu1  ;;  %v444_v60 = vpop.f32.mrf.mxu3  ;;  %v757_v20 = vsub.f32 %v1690_v43, %v756_v4  ;;  %934 = vmatpush.msra.mxu2 %v750_v59 }
  0xc7   : > { %v377_v16 = vadd.f32 %v376_v40, %v332_v53  ;;  %v411_v23 = vpop.f32.mrf.mxu2  ;;  %v745_v40 = vsub.f32 %v1667_v13, %v744_v28  ;;  %735 = vmatpush.msrb.mxu3 %v734_v24  ;;  %822 = vmatpush.msra.mxu0 %v1702_v8 }
  0xc8   : > { %938 = vmatpush.msra.mxu2 %v756_v4 }
  0xc9   : > { %v412_v53 = vadd.f32 %v411_v23, %v377_v16  ;;  %741 = vmatpush.msrb.mxu3 %v740_v38  ;;  %v764_v38 = vand.u32 4294901760, %v763_v33 }
  0xca   : > { %v477_v63 = vpop.f32.mrf.mxu0  ;;  %942 = vmatpush.msra.mxu2 %v762_v22 }
  0xcb   : > { %v478_v31 = vadd.f32 %v477_v63, %v439_v14  ;;  %v746_v63 = vand.u32 4294901760, %v745_v40  ;;  %v751_v14 = vsub.f32 %v1683_v32, %v750_v59  ;;  %v445_v23 = vadd.f32 %v444_v60, %v412_v53 }
  0xcd   : > { %747 = vmatpush.msrb.mxu3 %v746_v63  ;;  %v752_v25 = vand.u32 4294901760, %v751_v14 }
  0xce   : > { %v506_v37 = vpop.f32.mrf.mxu1 }
  0xcf   : > { %v1696_v54 = vadd.f32 %v506_v37, %v478_v31  ;;  %v758_v31 = vand.u32 4294901760, %v757_v20  ;;  %753 = vmatpush.msrb.mxu3 %v752_v25 }
  0xd1   : > { %v1707_v9 = vmul.f32 0.70710677, %v1696_v54  ;;  %759 = vmatpush.msrb.mxu3 %v758_v31 }
  0xd2   : > { %v481_v16 = vpop.f32.mrf.mxu0 }
  0xd3   : > { %v517_v24 = vmul.f32 %v1707_v9, %v1707_v9  ;;  %v482_v44 = vadd.f32 %v481_v16, %v445_v23  ;;  %765 = vmatpush.msrb.mxu3 %v764_v38 }
  0xd5   : > { %v1729_v41 = vmin.f32 %v517_v24, 16.0  ;;  %953 = vmatpush.msra.mxu3 %v1519_v39 }
  0xd6   : > { %v510_v37 = vpop.f32.mrf.mxu1 }
  0xd7   : > { %v519_v40 = vmul.f32 2.1237322e-06, %v1729_v41  ;;  %v530_v53 = vmul.f32 3.8918573e-05, %v1729_v41  ;;  %v1735_v60 = vadd.f32 %v510_v37, %v482_v44  ;;  %955 = vmatpush.msra.mxu3 %v1524_v42 }
  0xd9   : > { %v520_v45 = vadd.f32 0.00028619796, %v519_v40  ;;  %v531_v49 = vadd.f32 0.001143296, %v530_v53  ;;  %v1740_v63 = vmul.f32 0.70710677, %v1735_v60  ;;  %957 = vmatpush.msra.mxu3 %v1532_v46 }
  0xdb   : > { %v521_v50 = vmul.f32 %v520_v45, %v1729_v41  ;;  %v532_v55 = vmul.f32 %v531_v49, %v1729_v41  ;;  %v557_v14 = vmul.f32 %v1740_v63, %v1740_v63  ;;  %959 = vmatpush.msra.mxu3 %v1544_v51 }
  0xdd   : > { %v533_v56 = vadd.f32 0.014752088, %v532_v55  ;;  %v522_v62 = vadd.f32 0.0036580483, %v521_v50  ;;  %v1752_v16 = vmin.f32 %v557_v14, 16.0  ;;  %961 = vmatpush.msra.mxu3 %v1558_v58 }
  0xdf   : > { %v534_v39 = vmul.f32 %v533_v56, %v1729_v41  ;;  %v559_v0 = vmul.f32 2.1237322e-06, %v1752_v16  ;;  %v570_v6 = vmul.f32 3.8918573e-05, %v1752_v16  ;;  %v523_v7 = vmul.f32 %v522_v62, %v1729_v41  ;;  %963 = vmatpush.msra.mxu3 %v1574_v1 }
  0xe1   : > { %v535_v42 = vadd.f32 0.112945676, %v534_v39  ;;  %v560_v15 = vadd.f32 0.00028619796, %v559_v0  ;;  %v571_v20 = vadd.f32 0.001143296, %v570_v6  ;;  %965 = vmatpush.msra.mxu3 %v1581_v5 }
  0xe2   : > { %v524_v18 = vadd.f32 0.05243302, %v523_v7 }
  0xe3   : > { %v536_v46 = vmul.f32 %v535_v42, %v1729_v41  ;;  %v561_v11 = vmul.f32 %v560_v15, %v1752_v16  ;;  %v572_v17 = vmul.f32 %v571_v20, %v1752_v16  ;;  %967 = vmatpush.msra.mxu3 %v1592_v12 }
  0xe4   : > { %v525_v36 = vmul.f32 %v524_v18, %v1729_v41  ;;  %v1197_v18 = vld [vmem:[%s1850_s4] ss:$0 sm:$0xff] }
  0xe5   : > { %v537_v51 = vadd.f32 0.4994258, %v536_v46  ;;  %v573_v26 = vadd.f32 0.014752088, %v572_v17  ;;  %v562_v27 = vadd.f32 0.0036580483, %v561_v11  ;;  %969 = vmatpush.msra.mxu3 %v1606_v19 }
  0xe6   : > { %v526_v12 = vadd.f32 0.18741608, %v525_v36 }
  0xe7   : > { %v538_v58 = vmul.f32 %v537_v51, %v1729_v41  ;;  %v574_v34 = vmul.f32 %v573_v26, %v1752_v16  ;;  %v563_v5 = vmul.f32 %v562_v27, %v1752_v16  ;;  %971 = vmatpush.msra.mxu3 %v1622_v30 }
  0xe8   : > { %v527_v30 = vmul.f32 %v526_v12, %v1729_v41 }
  0xe9   : > { %v539_v1 = vadd.f32 1.0, %v538_v58  ;;  %v575_v57 = vadd.f32 0.112945676, %v574_v34  ;;  %973 = vmatpush.msra.mxu3 %v1629_v35  ;;  %v564_v19 = vadd.f32 0.05243302, %v563_v5 }
  0xea   : > { %v528_v59 = vadd.f32 1.1283791, %v527_v30 }
  0xeb   : > { %1198 = vrcp.f32 %v539_v1  ;;  %v576_v48 = vmul.f32 %v575_v57, %v1752_v16  ;;  %975 = vmatpush.msra.mxu3 %v1643_v52  ;;  %v565_v35 = vmul.f32 %v564_v19, %v1752_v16  ;;  %v551_v43 = vand.u32 2147483648, %v539_v1 }
  0xec   : > { %v549_v52 = vand.u32 2147483647, %v539_v1  ;;  %vm545_vm2 = vweird.f32 %v539_v1  ;;  %v529_v24 = vmul.f32 %v528_v59, %v1707_v9 }
  0xed   : > { %v577_v61 = vadd.f32 0.4994258, %v576_v48  ;;  %977 = vmatpush.msra.mxu3 %v1654_v3  ;;  %v566_v8 = vadd.f32 0.18741608, %v565_v35  ;;  %v552_v3 = vor.u32 1.1754944e-38, %v551_v43 }
  0xee   : > { %vm550_vm4 = vcmp.eq.f32.partialorder %v549_v52, 8.507059e+37 }
  0xef   : > { %v578_v2 = vmul.f32 %v577_v61, %v1752_v16  ;;  %979 = vmatpush.msra.mxu3 %v1671_v21  ;;  %v567_v31 = vmul.f32 %v566_v8, %v1752_v16 }
  0xf1   : > { %v1199_v10 = vpop.eup %1198  ;;  %v579_v28 = vadd.f32 1.0, %v578_v2  ;;  %981 = vmatpush.msra.mxu3 %v1678_v29  ;;  %v568_v38 = vadd.f32 1.1283791, %v567_v31 }
  0xf2   : > { %v541_v13 = vmul.f32 %v1199_v10, %v539_v1  ;;  %vm546_vm1 = vweird.f32 %v1199_v10 }
  0xf3   : > { %1200 = vrcp.f32 %v579_v28  ;;  %983 = vmatpush.msra.mxu3 %v1692_v47  ;;  %vm547_vm3 = vmor %vm545_vm2, %vm546_vm1  ;;  %v591_v29 = vand.u32 2147483648, %v579_v28  ;;  %v589_v53 = vand.u32 2147483647, %v579_v28  ;;  %v513_v47 = vmul.f32 0.5, %v1696_v54 }
  0xf4   : > { %v542_v32 = vsub.f32 1.0, %v541_v13  ;;  %vm585_vm6 = vweird.f32 %v579_v28  ;;  %v569_v55 = vmul.f32 %v568_v38, %v1740_v63  ;;  %v514_v54 = vmul.f32 0.5, %v1735_v60 }
  0xf5   : > { %v592_v50 = vor.u32 1.1754944e-38, %v591_v29  ;;  %vm590_vm8 = vcmp.eq.f32.partialorder %v589_v53, 8.507059e+37 }
  0xf6   : > { %v543_v4 = vmul.f32 %v1199_v10, %v542_v32 }
  0xf8   : > { %v544_v22 = vadd.f32 %v1199_v10, %v543_v4 }
  0xf9   : > { %v1201_v23 = vpop.eup %1200 }
  0xfa   : > { %v548_v25 = vsel %vm547_vm3, %v1199_v10, %v544_v22  ;;  %v581_v33 = vmul.f32 %v1201_v23, %v579_v28  ;;  %vm586_vm5 = vweird.f32 %v1201_v23 }
  0xfb   : > { %v553_v21 = vsel %vm550_vm4, %v552_v3, %v548_v25  ;;  %vm587_vm7 = vmor %vm585_vm6, %vm586_vm5 }
  0xfc   : > { %v554_v41 = vmul.f32 %v553_v21, %v529_v24  ;;  %v582_v44 = vsub.f32 1.0, %v581_v33 }
  0xfe   : > { %v1116_v37 = vclamps-f32 %v554_v41, 1.0  ;;  %v583_v40 = vmul.f32 %v1201_v23, %v582_v44 }
 0x100   : > { %v597_v45 = vadd.f32 1.0, %v1116_v37  ;;  %v584_v49 = vadd.f32 %v1201_v23, %v583_v40 }
 0x102   : > { %v599_v9 = vmul.f32 %v597_v45, %v513_v47  ;;  %v588_v14 = vsel %vm587_vm7, %v1201_v23, %v584_v49 }
 0x103   : > { %v593_v62 = vsel %vm590_vm8, %v592_v50, %v588_v14 }
 0x104   : > { %v653_v56 = vand.u32 4294901760, %v599_v9  ;;  %v594_v16 = vmul.f32 %v593_v62, %v569_v55 }
 0x106   : > { %v654_v39 = vsub.f32 %v599_v9, %v653_v56  ;;  %767 = vmatmul.f32.vlgmr.msrb.gmra.mxu3 %v653_v56  ;;  %v1117_v0 = vclamps-f32 %v594_v16, 1.0 }
 0x108   : > { %825 = vmatmul.f32.vlgmr.msra.gmra.mxu0 %v654_v39  ;;  %v655_v6 = vand.u32 4294901760, %v654_v39  ;;  %v598_v42 = vadd.f32 1.0, %v1117_v0 }
 0x10a   : > { %869 = vmatmul.f32.vlgmr.msra.gmra.mxu1 %v655_v6  ;;  %v656_v7 = vsub.f32 %v654_v39, %v655_v6  ;;  %v600_v15 = vmul.f32 %v598_v42, %v514_v54 }
 0x10c   : > { %v657_v20 = vand.u32 4294901760, %v656_v7  ;;  %v661_v46 = vand.u32 4294901760, %v600_v15 }
 0x10e   : > { %658 = vmatmul.f32.vlgmr.msrb.gmra.mxu2 %v657_v20  ;;  %771 = vmatmul.f32.gmra.mxu3 %v661_v46  ;;  %v662_v63 = vsub.f32 %v600_v15, %v661_v46 }
 0x110   : > { %830 = vmatmul.f32.gmra.mxu0 %v662_v63  ;;  %v663_v11 = vand.u32 4294901760, %v662_v63 }
 0x112   : > { %875 = vmatmul.f32.gmra.mxu1 %v663_v11  ;;  %v664_v17 = vsub.f32 %v662_v63, %v663_v11 }
 0x114   : > { %v665_v51 = vand.u32 4294901760, %v664_v17 }
 0x116   : > { %666 = vmatmul.f32.gmra.mxu2 %v665_v51  ;;  %985 = vmatmul.f32.vlgmr.msra.gmra.mxu3 %v653_v56 }
 0x11e   : > { %944 = vmatmul.f32.vlgmr.msra.gmra.mxu2 %v653_v56  ;;  %989 = vmatmul.f32.gmra.mxu3 %v661_v46 }
 0x126   : > { %948 = vmatmul.f32.gmra.mxu2 %v661_v46 }
 0x185   : > { %v826_v1 = vpop.f32.mrf.mxu0 }
 0x187   : > { %v870_v48 = vpop.f32.mrf.mxu1 }
 0x189   : > { %v768_v60 = vpop.f32.mrf.mxu3 }
 0x18d   : > { %v831_v30 = vpop.f32.mrf.mxu0 }
 0x18f   : > { %v876_v35 = vpop.f32.mrf.mxu1 }
 0x191   : > { %v659_v26 = vpop.f32.mrf.mxu2  ;;  %v772_v27 = vpop.f32.mrf.mxu3 }
 0x192   : > { %v660_v58 = vadd.f32 %v1197_v18, %v659_v26 }
 0x194   : > { %v769_v34 = vadd.f32 %v768_v60, %v660_v58 }
 0x196   : > { %v827_v5 = vadd.f32 %v826_v1, %v769_v34 }
 0x198   : > { %v871_v61 = vadd.f32 %v870_v48, %v827_v5 }
 0x199   : > { %v667_v36 = vpop.f32.mrf.mxu2  ;;  %v986_v19 = vpop.f32.mrf.mxu3 }
 0x19a   : > { %v668_v57 = vadd.f32 %v1197_v18, %v667_v36 }
 0x19c   : > { %v773_v12 = vadd.f32 %v772_v27, %v668_v57 }
 0x19e   : > { %v832_v28 = vadd.f32 %v831_v30, %v773_v12 }
 0x1a0   : > { %v877_v32 = vadd.f32 %v876_v35, %v832_v28 }
 0x1a1   : > { %v945_v2 = vpop.f32.mrf.mxu2  ;;  %v990_v4 = vpop.f32.mrf.mxu3 }
 0x1a2   : > { %v946_v10 = vadd.f32 %v945_v2, %v871_v61 }
 0x1a4   : > { %v987_v13 = vadd.f32 %v986_v19, %v946_v10 }
 0x1a6   : > { %993 = vst [vmem:[%s277_s30] sm:$0xff] %v987_v13 }
 0x1a9   : > { %v949_v43 = vpop.f32.mrf.mxu2 }
 0x1aa   : > { %v950_v59 = vadd.f32 %v949_v43, %v877_v32 }
 0x1ac   : > { %v991_v52 = vadd.f32 %v990_v4, %v950_v59 }
 0x1ae   : > { %994 = vst [vmem:[%s277_s30 + $0x8] sm:$0xff] %v991_v52 }
 0x1af   : > { %1319 = shalt.err (!%p1316_p10)
}
 0x1b0   : > { %s1368_s8 = smov 128   ;;  %s1369_s9 = smov 8  }
 0x1b1   : > { %1135 = dma.vmem_to_hbm [thread:$0]  (%p1472_p3), %s1009_s6, 256, %s1011_s7, %s996_s22, %s1368_s8, %s1368_s8, %s1369_s9  }
 0x1b2 PF: > { %s1025_s12 = sand.u32 1, %s1350_s18   ;;  %p1859_p12 = scmp.ge.s32.totalorder %s1362_s21, 2 }
 0x1b3   : > { %s1026_s13 = scalar_lea.sflag [#allocation4], %s1025_s12 }
 0x1b4   : > { %p1149_p13 = pnand %p1859_p12, %p1435_p6 }
 0x1b6   : > { %p1150_p0 = pneg %p1149_p13 }
 0x1b8   : > { %1345 = dma.done.wait (%p1150_p0), %s1026_s13, 256  }
 0x1b9   : > { %1347 = vsyncadd (%p1150_p0), %s1026_s13, 4294967040  ;;  %p19_p5 = scmp.ge.s32.totalorder %s1462_s14, 4   ;;  %s1860_s18 = smov %s1354_s19 }
 0x1ba   : > { %s1861_s19 = smov %s1358_s20  ;;  %s1862_s20 = smov %s1478_s23 }
 0x1bb   : > { %s1863_s21 = smov %s1462_s14  ;;  %21 = sbr.rel (!%p19_p5) target bundleno = 6 (0x6), region = 93 }
 0x1c0   :  { %1032 = vsyncpa [#allocation3], 1 }
 0x1c1   :  { %1034 = vsyncpa [#allocation3 + $0x1], 1 }
 0x1c2   :  { %1035 = vsyncpa [#allocation6], 1 }
 0x1c3   :  { %1036 = vsyncpa [#allocation4], 1 }
 0x1c4   :  { %1038 = vsyncpa [#allocation4 + $0x1], 1 }

</bundles_post_ra>
